<compile_context>
chip_gen: v5e
topology: v5e:2x2
jax: 0.10.0
libtpu: 0.0.40
codegen_flags: <defaults>
</compile_context>

<pallas_src>
import jax
import jax.numpy as jnp
from jax.experimental import pallas as pl
from jax.experimental.pallas import tpu as pltpu


def _cat_t_kernel(x_ref, o_ref, lbuf, rbuf, sem):
    # grid = (nb, nb); x_ref is the (T, T) VMEM tile of x block (i, j).
    # This single read produces BOTH output tiles:
    #   out[i*T:(i+1)*T,      j*T:(j+1)*T      ] = block        (left half)
    #   out[j*T:(j+1)*T, N + i*T : N + (i+1)*T ] = block.T      (right half)
    i = pl.program_id(0)
    j = pl.program_id(1)
    t = x_ref.shape[0]
    n = o_ref.shape[0]

    blk = x_ref[...]
    lbuf[...] = blk
    rbuf[...] = blk.T            # lane/sublane-aligned (T, T) transpose on XLU

    left_dst = o_ref.at[pl.ds(pl.multiple_of(i * t, t), t),
                        pl.ds(pl.multiple_of(j * t, t), t)]
    right_dst = o_ref.at[pl.ds(pl.multiple_of(j * t, t), t),
                         pl.ds(pl.multiple_of(n + i * t, t), t)]

    lcp = pltpu.make_async_copy(lbuf, left_dst, sem.at[0])
    rcp = pltpu.make_async_copy(rbuf, right_dst, sem.at[1])
    lcp.start()
    rcp.start()
    # Wait in the same step: keeps semaphore state step-local (megacore-safe);
    # the auto-pipelined input DMA for step k+1 overlaps these writes.
    lcp.wait()
    rcp.wait()


def _pick_tile(n):
    # Largest lane-aligned tile dividing N that still gives a grid extent >= 2
    # (so v7x's two TensorCores both get work); otherwise the largest divisor.
    best = None
    for t in (1024, 512, 256, 128):
        if n % t == 0:
            if best is None:
                best = t
            if n // t >= 2:
                return t
    return best


def cat_with_transpose(x):
    """x: arbitrary rank >= 2; flattened over dims 1.. must be square."""
    x2d = x.reshape(x.shape[0], -1)  # glue: torch's x.flatten(1)
    n, m = x2d.shape
    assert n == m, "cat((x, x.t()), dim=1) requires a square flattened matrix"

    t = _pick_tile(n)
    if t is None:
        # TODO(synk): non-128-multiple N uses the XLA concat fallback; a ragged
        # Pallas path would need masked edge-tile DMAs.
        return jnp.concatenate([x2d, x2d.T], axis=1)

    nb = n // t
    itemsize = jnp.dtype(x2d.dtype).itemsize

    return pl.pallas_call(
        _cat_t_kernel,
        out_shape=jax.ShapeDtypeStruct((n, 2 * n), x2d.dtype),
        grid=(nb, nb),
        in_specs=[pl.BlockSpec((t, t), lambda i, j: (i, j))],
        out_specs=pl.BlockSpec(memory_space=pl.ANY),   # manual DMA write-back
        scratch_shapes=[
            pltpu.VMEM((t, t), x2d.dtype),             # left-half staging
            pltpu.VMEM((t, t), x2d.dtype),             # right-half (transposed)
            pltpu.SemaphoreType.DMA((2,)),
        ],
        compiler_params=pltpu.CompilerParams(
            dimension_semantics=("parallel", "parallel"),
            vmem_limit_bytes=max(32 * 1024 * 1024, 5 * t * t * itemsize),
        ),
        cost_estimate=pl.CostEstimate(
            flops=0,
            transcendentals=0,
            bytes_accessed=3 * n * n * itemsize,       # read x once, write 2x
        ),
    )(x2d)


if __name__ == "__main__":
    key = jax.random.PRNGKey(0)

    # (batch=256, 16, 16) -> flatten(1) -> (256, 256): square, 128-aligned.
    # _pick_tile gives T=128, grid=(2, 2): exercises the multi-step,
    # single-read kernel path (both halves written from one block read).
    x = jax.random.normal(key, (256, 16, 16), dtype=jnp.float32)
    out = cat_with_transpose(x)
    jax.block_until_ready(out)

    x2d = x.reshape(x.shape[0], -1)
    ref = jnp.concatenate([x2d, x2d.T], axis=1)
    assert out.shape == (256, 512)
    assert jnp.allclose(out, ref), "mismatch vs reference (tiled path)"

    # Tiny non-128-aligned shape -> XLA fallback path.
    xs = jax.random.normal(key, (16, 4, 4), dtype=jnp.float32)
    outs = cat_with_transpose(xs)
    jax.block_until_ready(outs)
    xs2d = xs.reshape(xs.shape[0], -1)
    refs = jnp.concatenate([xs2d, xs2d.T], axis=1)
    assert outs.shape == (16, 32)
    assert jnp.allclose(outs, refs), "mismatch vs reference (fallback path)"

    print("KERNEL_OK")
</pallas_src>

<mosaic_0001>
module attributes {stable_mosaic.version = 11 : i64} {
  func.func @_cat_t_kernel(%arg0: i32, %arg1: i32, %arg2: memref<128x128xf32, #tpu.memory_space<vmem>>, %arg3: memref<256x512xf32, #tpu.memory_space<any>>, %arg4: memref<128x128xf32, #tpu.memory_space<vmem>>, %arg5: memref<128x128xf32, #tpu.memory_space<vmem>>, %arg6: memref<2x!tpu.dma_semaphore, #tpu.memory_space<semaphore_mem>>) attributes {dimension_semantics = [#tpu.dimension_semantics<parallel>, #tpu.dimension_semantics<parallel>], iteration_bounds = array<i64: 2, 2>, scalar_prefetch = 0 : i64, scratch_operands = 3 : i64, tpu.core_type = #tpu.core_type<tc>, window_params = [{transform_indices = @transform_0, window_bounds = array<i64: 128, 128>}, {}]} {
    %c0 = arith.constant 0 : index
    %c0_0 = arith.constant 0 : index
    %0 = vector.load %arg2[%c0, %c0_0] : memref<128x128xf32, #tpu.memory_space<vmem>>, vector<128x128xf32>
    %c0_1 = arith.constant 0 : index
    %c0_2 = arith.constant 0 : index
    %1 = vector.load %arg4[%c0_1, %c0_2] : memref<128x128xf32, #tpu.memory_space<vmem>>, vector<128x128xf32>
    tpu.vector_store %arg4[%c0_1, %c0_2], %0 {strides = array<i32>} : memref<128x128xf32, #tpu.memory_space<vmem>>, vector<128x128xf32>,
    %2 = tpu.transpose %0, [1, 0] : vector<128x128xf32> -> vector<128x128xf32>
    %c0_3 = arith.constant 0 : index
    %c0_4 = arith.constant 0 : index
    %3 = vector.load %arg5[%c0_3, %c0_4] : memref<128x128xf32, #tpu.memory_space<vmem>>, vector<128x128xf32>
    tpu.vector_store %arg5[%c0_3, %c0_4], %2 {strides = array<i32>} : memref<128x128xf32, #tpu.memory_space<vmem>>, vector<128x128xf32>,
    %c128_i32 = arith.constant 128 : i32
    %4 = arith.muli %arg0, %c128_i32 : i32
    %5 = tpu.assume_multiple %4, 128 : i32
    %c128_i32_5 = arith.constant 128 : i32
    %6 = arith.muli %arg1, %c128_i32_5 : i32
    %7 = tpu.assume_multiple %6, 128 : i32
    %c128_i32_6 = arith.constant 128 : i32
    %8 = arith.muli %arg1, %c128_i32_6 : i32
    %9 = tpu.assume_multiple %8, 128 : i32
    %c128_i32_7 = arith.constant 128 : i32
    %10 = arith.muli %arg0, %c128_i32_7 : i32
    %c256_i32 = arith.constant 256 : i32
    %11 = arith.addi %c256_i32, %10 : i32
    %12 = tpu.assume_multiple %11, 128 : i32
    %c0_i32 = arith.constant 0 : i32
    %13 = tpu.memref_slice %arg3[%5, %7] : memref<256x512xf32, #tpu.memory_space<any>> -> memref<128x128xf32, #tpu.memory_space<any>>
    %14 = tpu.memref_slice %arg6[%c0_i32] : memref<2x!tpu.dma_semaphore, #tpu.memory_space<semaphore_mem>> -> memref<1x!tpu.dma_semaphore, #tpu.memory_space<semaphore_mem>>
    %15 = tpu.memref_squeeze %14 : memref<1x!tpu.dma_semaphore, #tpu.memory_space<semaphore_mem>> -> memref<!tpu.dma_semaphore, #tpu.memory_space<semaphore_mem>>
    tpu.enqueue_dma source(%arg4 : memref<128x128xf32, #tpu.memory_space<vmem>>) target(%13 : memref<128x128xf32, #tpu.memory_space<any>>) target_semaphore(%15 : memref<!tpu.dma_semaphore, #tpu.memory_space<semaphore_mem>>)
    %c1_i32 = arith.constant 1 : i32
    %16 = tpu.memref_slice %arg3[%9, %12] : memref<256x512xf32, #tpu.memory_space<any>> -> memref<128x128xf32, #tpu.memory_space<any>>
    %17 = tpu.memref_slice %arg6[%c1_i32] : memref<2x!tpu.dma_semaphore, #tpu.memory_space<semaphore_mem>> -> memref<1x!tpu.dma_semaphore, #tpu.memory_space<semaphore_mem>>
    %18 = tpu.memref_squeeze %17 : memref<1x!tpu.dma_semaphore, #tpu.memory_space<semaphore_mem>> -> memref<!tpu.dma_semaphore, #tpu.memory_space<semaphore_mem>>
    tpu.enqueue_dma source(%arg5 : memref<128x128xf32, #tpu.memory_space<vmem>>) target(%16 : memref<128x128xf32, #tpu.memory_space<any>>) target_semaphore(%18 : memref<!tpu.dma_semaphore, #tpu.memory_space<semaphore_mem>>)
    %c0_i32_8 = arith.constant 0 : i32
    %19 = tpu.memref_slice %arg3[%5, %7] : memref<256x512xf32, #tpu.memory_space<any>> -> memref<128x128xf32, #tpu.memory_space<any>>
    %20 = tpu.memref_slice %arg6[%c0_i32_8] : memref<2x!tpu.dma_semaphore, #tpu.memory_space<semaphore_mem>> -> memref<1x!tpu.dma_semaphore, #tpu.memory_space<semaphore_mem>>
    %21 = tpu.memref_squeeze %20 : memref<1x!tpu.dma_semaphore, #tpu.memory_space<semaphore_mem>> -> memref<!tpu.dma_semaphore, #tpu.memory_space<semaphore_mem>>
    tpu.wait_dma2 semaphore(%21 : memref<!tpu.dma_semaphore, #tpu.memory_space<semaphore_mem>>) src(%arg4 : memref<128x128xf32, #tpu.memory_space<vmem>>) dst(%19 : memref<128x128xf32, #tpu.memory_space<any>>)
    %c1_i32_9 = arith.constant 1 : i32
    %22 = tpu.memref_slice %arg3[%9, %12] : memref<256x512xf32, #tpu.memory_space<any>> -> memref<128x128xf32, #tpu.memory_space<any>>
    %23 = tpu.memref_slice %arg6[%c1_i32_9] : memref<2x!tpu.dma_semaphore, #tpu.memory_space<semaphore_mem>> -> memref<1x!tpu.dma_semaphore, #tpu.memory_space<semaphore_mem>>
    %24 = tpu.memref_squeeze %23 : memref<1x!tpu.dma_semaphore, #tpu.memory_space<semaphore_mem>> -> memref<!tpu.dma_semaphore, #tpu.memory_space<semaphore_mem>>
    tpu.wait_dma2 semaphore(%24 : memref<!tpu.dma_semaphore, #tpu.memory_space<semaphore_mem>>) src(%arg5 : memref<128x128xf32, #tpu.memory_space<vmem>>) dst(%22 : memref<128x128xf32, #tpu.memory_space<any>>)
    return
  }
  func.func @transform_0(%arg0: i32, %arg1: i32) -> (i32, i32) {
    %c0_i32 = arith.constant 0 : i32
    return %arg0, %arg1 : i32, i32
  }
}

</mosaic_0001>

<bundles_post_ra>
// kernel: tpu_custom_call.1
= control target key start
LH: loop header
LB: loop body
LE: loop exit
PB: predicated region body
PF: predicated region fallthrough
CT: control target
= control target key end

     0   :  { %6 = vsyncpa [#allocation6], 0  ;;  %s718_s0 = inlined_call_operand.hbm [shape: f32[256,256], index: 0, kind: input, shape index: {}]   ;;  %s719_s1 = inlined_call_operand.hbm [shape: f32[256,512], index: 1, kind: output, shape index: {}]  }
   0x1   :  { %8 = vsyncpa [#allocation6 + $0x1], 0  ;;  %s556_s6 = smov 0   ;;  %s558_s7 = smov 0  }
   0x2   :  { %s560_s8 = smov 0   ;;  %s562_s9 = smov 0  }
   0x3   :  { %s564_s10 = smov 0   ;;  %s566_s11 = smov 0  }
   0x4   :  { %s568_s12 = smov 0   ;;  %s570_s13 = smov 0  }
   0x5 LB: > { %s289_s14 = sadd.s32 4294967295, %s536_s13   ;;  %s20_s15 = sadd.s32 1, %s528_s11  ;;  %s536_s13 = sphi %s570_s13, %s14_s13   ;;  %s532_s12 = sphi %s568_s12, %s728_s12   ;;  %s528_s11 = sphi %s566_s11, %s727_s11   ;;  %s524_s10 = sphi %s564_s10, %s726_s10   ;;  %s520_s9 = sphi %s562_s9, %s725_s9   ;;  %s516_s8 = sphi %s560_s8, %s724_s8   ;;  %s512_s7 = sphi %s558_s7, %s723_s7   ;;  %s508_s6 = sphi %s556_s6, %s722_s6  }
   0x6   : > { %p21_p0 = scmp.ge.s32.totalorder %s20_s15, 2  ;;  %s23_s16 = sadd.s32 1, %s532_s12 }
   0x7   : > { %s32_s17 = sadd.s32 1, %s516_s8  ;;  %p38_p1 = scmp.ne.s32.totalorder %s516_s8, %s512_s7 }
   0x8   : > { %s730_s15 = smov (%p21_p0, %s20_s15), 0  ;;  %s732_s16 = smov (!%p21_p0, %s23_s16), %s532_s12 }
   0x9   : > { %s28_s18 = ssub.s32 %s528_s11, %s730_s15  ;;  %p39_p2 = scmp.eq.s32.totalorder %s536_s13, 0 }
   0xa   : > { %p25_p3 = scmp.ge.s32.totalorder %s732_s16, 2  ;;  %p45_p4 = scmp.ne.s32.totalorder %s512_s7, %s508_s6 }
   0xb   : > { %p607_p5 = por %p39_p2, %p38_p1  ;;  %p46_p6 = scmp.eq.s32.totalorder %s289_s14, 0 }
   0xc   : > { %s734_s16 = smov (%p25_p3, %s732_s16), 0  ;;  %p315_p8 = scmp.lt.s32.totalorder %s536_s13, 4 }
   0xd   : > { %p613_p7 = por %p46_p6, %p45_p4  ;;  %s27_s21 = ssub.s32 %s532_s12, %s734_s16 }
   0xe   : > { %s29_s22 = sor.u32 %s28_s18, %s27_s21  ;;  %s60_s23 = sand.u32 1, %s516_s8  }
   0xf   : > { %p30_p9 = scmp.eq.s32.totalorder %s29_s22, 0  ;;  %s293_s24 = sshll.u32 %s60_s23, 7 }
  0x10   : > { %s308_s25 = sshll.u32 %s532_s12, 5  ;;  %s64_s29 = scalar_lea.vmem [#allocation5], %s293_s24 }
  0x11   : > { %s623_s26 = scalar_select %p30_p9, %s516_s8, %s32_s17  }
  0x12   : > { %s69_s27 = sadd.s32 %s528_s11, %s308_s25  ;;  %s74_s30 = sshll.u32 %s64_s29, 4  ;;  %s75_s30 = int_to_ptr.vmem [resolvable:$true] %s74_s30 }
  0x13   : > { %s296_s28 = sshll.u32 %s69_s27, 3  ;;  %p312_p10 = pnand %p315_p8, %p607_p5 }
  0x14   : > { %s71_s4 = scalar_lea.hbm %s718_s0, %s296_s28  ;;  %s61_s6 = scalar_lea.sflag [#allocation6], %s60_s23 }
  0x15   : > { %s72_s5 = sshll.u32 %s71_s4, 4  ;;  %s538_s14 = smov 256   ;;  %s73_s5 = int_to_ptr.hbm [resolvable:$true] %s72_s5 }
  0x16   : > { %s539_s18 = smov 128   ;;  %s540_s21 = smov 8  }
  0x17   : > { %314 = dma.hbm_to_vmem [thread:$0]  (!%p312_p10), %s73_s5, 2048, %s75_s30, %s61_s6, %s538_s14, %s539_s18, %s540_s21  }
  0x18   : > { %p298_p11 = scmp.lt.s32.totalorder %s536_s13, 1 }
  0x19   : > { %s86_s17 = sand.u32 (!%p298_p11), 1, %s512_s7  }
  0x1a   : > { %84 = sbr.rel (%p298_p11) target bundleno = 325 (0x145), region = 24  ;;  %s299_s22 = sshll.u32 (!%p298_p11), %s86_s17, 7 }
  0x1b   : > { %s87_s24 = scalar_lea.sflag (!%p298_p11), [#allocation6], %s86_s17  ;;  %s635_s25 = scalar_lea.vmem (!%p298_p11), [#allocation5], %s299_s22 }
  0x1f   : > { %499 = dma.done.wait (%p613_p7), %s87_s24, 2048  }
  0x20   : > { %501 = vsyncadd (%p613_p7), %s87_s24, 4294965248  ;;  %v104_v0 = vld [vmem:[%s635_s25] sm:$0xff]  ;;  %v105_v1 = vld [vmem:[%s635_s25 + $0x8] sm:$0xff]  ;;  %s300_s19 = sshll.u32 %s524_s10, 7  ;;  %s301_s20 = sshll.u32 %s520_s9, 7 }
  0x21   : > { %120 = vst [vmem:[#allocation2] sm:$0xff] %v104_v0  ;;  %136 = vxpose.xlu0.b32.start [1/16] %v104_v0, 128  ;;  %v106_v2 = vld [vmem:[%s635_s25 + $0x10] sm:$0xff]  ;;  %v107_v3 = vld [vmem:[%s635_s25 + $0x18] sm:$0xff]  ;;  %v108_v4 = vld [vmem:[%s635_s25 + $0x20] sm:$0xff]  ;;  %s189_s23 = sshra.s32 %s300_s19, 3  ;;  %s659_s27 = sadd.s32 256, %s300_s19 }
  0x22   : > { %121 = vst [vmem:[#allocation2 + $0x8] sm:$0xff] %v105_v1  ;;  %v109_v5 = vld [vmem:[%s635_s25 + $0x28] sm:$0xff]  ;;  %v110_v6 = vld [vmem:[%s635_s25 + $0x30] sm:$0xff]  ;;  %v111_v7 = vld [vmem:[%s635_s25 + $0x38] sm:$0xff]  ;;  %s187_s28 = sshra.s32 %s301_s20, 7  ;;  %s302_s29 = sshll.u32 %s189_s23, 2 }
  0x23   : > { %122 = vst [vmem:[#allocation2 + $0x10] sm:$0xff] %v106_v2  ;;  %v112_v8 = vld [vmem:[%s635_s25 + $0x40] sm:$0xff]  ;;  %v113_v9 = vld [vmem:[%s635_s25 + $0x48] sm:$0xff]  ;;  %v114_v10 = vld [vmem:[%s635_s25 + $0x50] sm:$0xff]  ;;  %s203_s30 = sshra.s32 %s659_s27, 7  ;;  %s192_s2 = sadd.s32 %s302_s29, %s187_s28 }
  0x24   : > { %123 = vst [vmem:[#allocation2 + $0x18] sm:$0xff] %v107_v3  ;;  %v115_v11 = vld [vmem:[%s635_s25 + $0x58] sm:$0xff]  ;;  %v116_v12 = vld [vmem:[%s635_s25 + $0x60] sm:$0xff]  ;;  %v117_v13 = vld [vmem:[%s635_s25 + $0x68] sm:$0xff]  ;;  %s205_s3 = sshra.s32 %s301_s20, 3  ;;  %s303_s4 = sshll.u32 %s192_s2, 3 }
  0x25   : > { %124 = vst [vmem:[#allocation2 + $0x20] sm:$0xff] %v108_v4  ;;  %v118_v14 = vld [vmem:[%s635_s25 + $0x70] sm:$0xff]  ;;  %v119_v15 = vld [vmem:[%s635_s25 + $0x78] sm:$0xff]  ;;  %s194_s14 = scalar_lea.hbm %s719_s1, %s303_s4  ;;  %s541_s18 = smov [#allocation2]  }
  0x26   : > { %125 = vst [vmem:[#allocation2 + $0x28] sm:$0xff] %v109_v5  ;;  %s195_s21 = sshll.u32 %s541_s18, 4  ;;  %s197_s17 = sshll.u32 %s194_s14, 4  ;;  %s196_s21 = int_to_ptr.vmem [resolvable:$true] %s195_s21  ;;  %s198_s17 = int_to_ptr.hbm [resolvable:$true] %s197_s17 }
  0x27   : > { %126 = vst [vmem:[#allocation2 + $0x30] sm:$0xff] %v110_v6  ;;  %s430_s9 = sshra.s32 %s198_s17, 4  ;;  %s434_s25 = scalar_lea.hbm %s719_s1, 1024  ;;  %s431_s9 = int_to_ptr.hbm [resolvable:$true] %s430_s9 }
  0x28   : > { %127 = vst [vmem:[#allocation2 + $0x38] sm:$0xff] %v111_v7  ;;  %s432_s10 = scalar_lea.hbm %s431_s9, 128  ;;  %p435_p13 = scmp.lt.s32.totalorder %s431_s9, %s719_s1 }
  0x29   : > { %137 = vxpose.xlu0.b32.cont [2/16] %v105_v1, 128  ;;  %128 = vst [vmem:[#allocation2 + $0x40] sm:$0xff] %v112_v8  ;;  %p433_p12 = scmp.ne.s32.totalorder %s431_s9, %s432_s10  ;;  %p436_p0 = scmp.lt.s32.totalorder %s434_s25, %s432_s10 }
  0x2a   : > { %129 = vst [vmem:[#allocation2 + $0x48] sm:$0xff] %v113_v9 }
  0x2b   : > { %130 = vst [vmem:[#allocation2 + $0x50] sm:$0xff] %v114_v10  ;;  %p437_p1 = por %p436_p0, %p435_p13 }
  0x2c   : > { %131 = vst [vmem:[#allocation2 + $0x58] sm:$0xff] %v115_v11 }
  0x2d   : > { %132 = vst [vmem:[#allocation2 + $0x60] sm:$0xff] %v116_v12  ;;  %p438_p2 = pnand %p437_p1, %p433_p12 }
  0x2e   : > { %133 = vst [vmem:[#allocation2 + $0x68] sm:$0xff] %v117_v13 }
  0x2f   : > { %134 = vst [vmem:[#allocation2 + $0x70] sm:$0xff] %v118_v14 }
  0x30   : > { %135 = vst [vmem:[#allocation2 + $0x78] sm:$0xff] %v119_v15 }
  0x31   : > { %138 = vxpose.xlu0.b32.cont [3/16] %v106_v2, 128 }
  0x39   : > { %139 = vxpose.xlu0.b32.cont [4/16] %v107_v3, 128 }
  0x41   : > { %140 = vxpose.xlu0.b32.cont [5/16] %v108_v4, 128 }
  0x49   : > { %141 = vxpose.xlu0.b32.cont [6/16] %v109_v5, 128 }
  0x51   : > { %142 = vxpose.xlu0.b32.cont [7/16] %v110_v6, 128 }
  0x59   : > { %143 = vxpose.xlu0.b32.cont [8/16] %v111_v7, 128 }
  0x61   : > { %144 = vxpose.xlu0.b32.cont [9/16] %v112_v8, 128 }
  0x69   : > { %145 = vxpose.xlu0.b32.cont [10/16] %v113_v9, 128 }
  0x71   : > { %146 = vxpose.xlu0.b32.cont [11/16] %v114_v10, 128 }
  0x79   : > { %147 = vxpose.xlu0.b32.cont [12/16] %v115_v11, 128 }
  0x81   : > { %148 = vxpose.xlu0.b32.cont [13/16] %v116_v12, 128 }
  0x89   : > { %149 = vxpose.xlu0.b32.cont [14/16] %v117_v13, 128 }
  0x91   : > { %150 = vxpose.xlu0.b32.cont [15/16] %v118_v14, 128 }
  0x99   : > { %151 = vxpose.xlu0.b32.end [16/16] %v119_v15, 128 }
  0x9a   : > { %441 = shalt.err (!%p438_p2)  }
  0x9b   : > { %s542_s28 = smov 128   ;;  %s543_s29 = smov 512  }
  0x9c   : > { %s544_s2 = smov 8   ;;  %s304_s4 = sshll.u32 %s205_s3, 2 }
  0x9d   : > { %202 = dma.vmem_to_hbm [thread:$0]  %s196_s21, 2048, %s198_s17, [#allocation4], %s542_s28, %s543_s29, %s544_s2 }
  0x9e   : > { %s678_s5 = sadd.s32 %s304_s4, %s203_s30  ;;  %s545_s21 = smov [#allocation3]  }
  0x9f   : > { %s305_s30 = sshll.u32 %s678_s5, 3  ;;  %s212_s17 = sshll.u32 %s545_s21, 4  ;;  %s213_s17 = int_to_ptr.vmem [resolvable:$true] %s212_s17 }
  0xa0   : > { %s210_s14 = scalar_lea.hbm %s719_s1, %s305_s30 }
  0xa1   : > { %s214_s18 = sshll.u32 %s210_s14, 4  ;;  %s215_s18 = int_to_ptr.hbm [resolvable:$true] %s214_s18 }
  0xa2   : > { %s454_s9 = sshra.s32 %s215_s18, 4  ;;  %s455_s9 = int_to_ptr.hbm [resolvable:$true] %s454_s9 }
  0xa3   : > { %s456_s10 = scalar_lea.hbm %s455_s9, 128  ;;  %p459_p4 = scmp.lt.s32.totalorder %s455_s9, %s719_s1 }
  0xa4   : > { %p457_p3 = scmp.ne.s32.totalorder %s455_s9, %s456_s10  ;;  %p460_p5 = scmp.lt.s32.totalorder %s434_s25, %s456_s10 }
  0xa6   : > { %p461_p6 = por %p460_p5, %p459_p4 }
  0xa8   : > { %p462_p7 = pnand %p461_p6, %p457_p3 }
  0xc5   : > { %v152_v16 = vpop.trf.xlu0 }
  0xc6   : > { %168 = vst [vmem:[#allocation3] sm:$0xff] %v152_v16 }
  0xcd   : > { %v153_v17 = vpop.trf.xlu0 }
  0xce   : > { %169 = vst [vmem:[#allocation3 + $0x8] sm:$0xff] %v153_v17 }
  0xd5   : > { %v154_v18 = vpop.trf.xlu0 }
  0xd6   : > { %170 = vst [vmem:[#allocation3 + $0x10] sm:$0xff] %v154_v18 }
  0xdd   : > { %v155_v19 = vpop.trf.xlu0 }
  0xde   : > { %171 = vst [vmem:[#allocation3 + $0x18] sm:$0xff] %v155_v19 }
  0xe5   : > { %v156_v20 = vpop.trf.xlu0 }
  0xe6   : > { %172 = vst [vmem:[#allocation3 + $0x20] sm:$0xff] %v156_v20 }
  0xed   : > { %v157_v21 = vpop.trf.xlu0 }
  0xee   : > { %173 = vst [vmem:[#allocation3 + $0x28] sm:$0xff] %v157_v21 }
  0xf5   : > { %v158_v22 = vpop.trf.xlu0 }
  0xf6   : > { %174 = vst [vmem:[#allocation3 + $0x30] sm:$0xff] %v158_v22 }
  0xfd   : > { %v159_v23 = vpop.trf.xlu0 }
  0xfe   : > { %175 = vst [vmem:[#allocation3 + $0x38] sm:$0xff] %v159_v23 }
 0x105   : > { %v160_v24 = vpop.trf.xlu0 }
 0x106   : > { %176 = vst [vmem:[#allocation3 + $0x40] sm:$0xff] %v160_v24 }
 0x10d   : > { %v161_v25 = vpop.trf.xlu0 }
 0x10e   : > { %177 = vst [vmem:[#allocation3 + $0x48] sm:$0xff] %v161_v25 }
 0x115   : > { %v162_v26 = vpop.trf.xlu0 }
 0x116   : > { %178 = vst [vmem:[#allocation3 + $0x50] sm:$0xff] %v162_v26 }
 0x11d   : > { %v163_v27 = vpop.trf.xlu0 }
 0x11e   : > { %179 = vst [vmem:[#allocation3 + $0x58] sm:$0xff] %v163_v27 }
 0x125   : > { %v164_v28 = vpop.trf.xlu0 }
 0x126   : > { %180 = vst [vmem:[#allocation3 + $0x60] sm:$0xff] %v164_v28 }
 0x12d   : > { %v165_v29 = vpop.trf.xlu0 }
 0x12e   : > { %181 = vst [vmem:[#allocation3 + $0x68] sm:$0xff] %v165_v29 }
 0x135   : > { %v166_v30 = vpop.trf.xlu0 }
 0x136   : > { %182 = vst [vmem:[#allocation3 + $0x70] sm:$0xff] %v166_v30 }
 0x13d   : > { %v167_v31 = vpop.trf.xlu0 }
 0x13e   : > { %183 = vst [vmem:[#allocation3 + $0x78] sm:$0xff] %v167_v31 }
 0x13f   : > { %465 = shalt.err (!%p462_p7)  }
 0x140   : > { %219 = dma.vmem_to_hbm [thread:$0]  %s213_s17, 2048, %s215_s18, [#allocation4 + $0x1], %s542_s28, %s543_s29, %s544_s2 }
 0x141   : > { %502 = dma.done.wait [#allocation4], 2048 }
 0x142   : > { %503 = vsyncadd [#allocation4], 4294965248 }
 0x143   : > { %504 = dma.done.wait [#allocation4 + $0x1], 2048 }
 0x144   : > { %505 = vsyncadd [#allocation4 + $0x1], 4294965248 }
 0x145 PF: > { %s14_s13 = sadd.s32 1, %s536_s13   ;;  %s722_s6 = smov %s512_s7 }
 0x146   : > { %p11_p8 = scmp.ge.s32.totalorder %s14_s13, 5   ;;  %s723_s7 = smov %s516_s8 }
 0x147   : > { %s724_s8 = smov %s623_s26  ;;  %s725_s9 = smov %s528_s11 }
 0x148   : > { %s726_s10 = smov %s532_s12  ;;  %s727_s11 = smov %s730_s15 }
 0x149   : > { %s728_s12 = smov %s734_s16  ;;  %13 = sbr.rel (!%p11_p8) target bundleno = 5 (0x5), region = 52 }
 0x14e   :  { %226 = vsyncpa [#allocation6], 1 }
 0x14f   :  { %228 = vsyncpa [#allocation6 + $0x1], 1 }
 0x150   :  { %229 = vsyncmov [#allocation4] }
 0x153   :  { %s230_s25 = vpop.sfrf %229 }
 0x154   :  { %p306_p9 = scmp.ne.s32.totalorder %s230_s25, 0 }
 0x156   :  { %234 = shalt.err (%p306_p9)  }
 0x157   :  { %236 = vsyncmov [#allocation4 + $0x1] }
 0x15a   :  { %s237_s23 = vpop.sfrf %236 }
 0x15b   :  { %p307_p10 = scmp.ne.s32.totalorder %s237_s23, 0 }
 0x15d   :  { %241 = shalt.err (%p307_p10)  }

</bundles_post_ra>
